<compile_context>
chip_gen: v7x
topology: tpu7x:2x2x1
jax: 0.10.0
libtpu: 0.0.40
codegen_flags: <defaults>
</compile_context>

<pallas_src>
import functools

import jax
import jax.numpy as jnp
import numpy as np
from jax.experimental import pallas as pl
from jax.experimental.pallas import tpu as pltpu

BN_EPS = 1e-5


def _make_kernels(TR, Wo, Cin, Cconv):
    """Kernels for a fixed tile geometry (all Python ints, closed over)."""
    G = 3 * Cin          # rows per kh-group in the tap-major layout (kw, c) interleave
    Cout = Cconv + Cin
    M = TR * Wo          # pixels per tile (lane axis)

    def conv_pool(xb_ref, xh_ref, wa_ref, wb_ref):
        """Conv(3x3,s2,p1) + MaxPool(2x2,s2) for one (sample, row-tile).

        xb_ref: (2G, M)  rows = kh*G + kw*Cin + c, pixel (a, j) at lane a*Wo + j,
                value  = xpad[c, 2a+kh, 2j+kw]  for kh in {0, 1}
        xh_ref: (G, Wo)  halo row: xpad[c, 2*(row_tile_end), 2j+kw]   (kh=2 halo)
        wa_ref: (Cconv, 2G)  weights for kh in {0,1};  wb_ref: (Cconv, G) for kh=2
        """
        xb = xb_ref[...]                                           # (2G, M)
        if TR > 1:
            # kh=2 group = kh=0 group shifted down one output row (+Wo lanes) + halo.
            shifted = jnp.concatenate([xb[0:G, Wo:], xh_ref[...]], axis=-1)   # (G, M)
        else:
            shifted = xh_ref[...]

        main = (jnp.dot(wa_ref[...], xb, preferred_element_type=jnp.float32) +
                jnp.dot(wb_ref[...], shifted, preferred_element_type=jnp.float32))

        # MaxPool 2x2 s2: padded pixels (2ro+1, 2co+1..2) and (2ro+2, 2co+1..2)
        p00 = xb[G + Cin:G + 2 * Cin, :]        # kh=1, kw=1
        p01 = xb[G + 2 * Cin:G + 3 * Cin, :]    # kh=1, kw=2
        p10 = shifted[Cin:2 * Cin, :]           # kh=2, kw=1
        p11 = shifted[2 * Cin:3 * Cin, :]       # kh=2, kw=2
        ext = jnp.maximum(jnp.maximum(p00, p01), jnp.maximum(p10, p11))       # (Cin, M)
        return main, ext

    def stats_kernel(xb_ref, xh_ref, wa_ref, wb_ref, stats_ref):
        # stats_ref: (Cout, 2)  col 0 = per-tile per-channel mean, col 1 = centered M2
        main, ext = conv_pool(xb_ref, xh_ref, wa_ref, wb_ref)
        inv_m = jnp.float32(1.0 / M)
        mu_m = jnp.sum(main, axis=1, keepdims=True) * inv_m
        mu_e = jnp.sum(ext, axis=1, keepdims=True) * inv_m
        stats_ref[0:Cconv, 0:1] = mu_m
        stats_ref[Cconv:Cout, 0:1] = mu_e
        stats_ref[0:Cconv, 1:2] = jnp.sum((main - mu_m) ** 2, axis=1, keepdims=True)
        stats_ref[Cconv:Cout, 1:2] = jnp.sum((ext - mu_e) ** 2, axis=1, keepdims=True)

    def norm_kernel(xb_ref, xh_ref, wa_ref, wb_ref,
                    scale_ref, bias_ref, alpha_ref, out_ref):
        # scale/bias: (Cout, 1) VMEM (BatchNorm folded to y = x*scale + bias)
        # alpha_ref : (1, 1) SMEM scalar (shared PReLU slope)
        # out_ref   : (Cout, M) NCHW output block (pixels lane-dense)
        main, ext = conv_pool(xb_ref, xh_ref, wa_ref, wb_ref)
        alpha = alpha_ref[0, 0]

        ym = main * scale_ref[0:Cconv, :] + bias_ref[0:Cconv, :]
        ym = jnp.where(ym >= 0, ym, alpha * ym)
        ye = ext * scale_ref[Cconv:Cout, :] + bias_ref[Cconv:Cout, :]
        ye = jnp.where(ye >= 0, ye, alpha * ye)

        out_ref[0:Cconv, :] = ym
        out_ref[Cconv:Cout, :] = ye

    return stats_kernel, norm_kernel


def _pick_row_tile(ho, wo, target_px):
    """Largest divisor TR of `ho` with TR*wo a multiple of 128 and <= target_px.

    Falls back to the whole sample (block dim == full array dim is always legal)."""
    best = None
    for t in range(1, ho + 1):
        if ho % t:
            continue
        px = t * wo
        if px <= target_px and px % 128 == 0:
            best = t
    return best if best is not None else ho


@functools.partial(jax.jit, static_argnames=("target_px",))
def initial_block(x_nchw, w_oihw, gamma, beta, alpha, *, target_px=32 * 1024):
    """x: (N, Cin, H, W), w: (Cconv, Cin, 3, 3) -> (N, Cconv+Cin, H//2, W//2)."""
    N, Cin, H, W = x_nchw.shape
    Cconv = w_oihw.shape[0]
    Cout = Cconv + Cin
    assert H % 2 == 0 and W % 2 == 0, "InitialBlock requires even spatial dims"
    Ho, Wo = H // 2, W // 2
    TR = _pick_row_tile(Ho, Wo, target_px)    # output-row tile (divides Ho)
    R = Ho // TR
    M = TR * Wo
    G = 3 * Cin

    # ---- wrapper relayout (one XLA pass): zero-pad + stride-2 tap-major planes ----
    # xb[n, kh*G + kw*Cin + c, a*Wo + j] = xpad[n, c, 2a+kh, 2j+kw]   for kh in {0,1}
    # xh[n, r, kw*Cin + c, j]            = xpad[n, c, 2*((r+1)*TR), 2j+kw]  (kh=2 halo)
    x = x_nchw.astype(jnp.float32)
    xpad = jnp.pad(x, ((0, 0), (0, 0), (1, 1), (1, 1)))            # (N, Cin, H+2, W+2)

    def plane(ph, kw):
        return xpad[:, :, ph:ph + H:2, kw:kw + W:2]                # (N, Cin, Ho, Wo)

    xb = jnp.stack([plane(ph, kw) for ph in (0, 1) for kw in (0, 1, 2)], axis=1)
    xb = xb.reshape(N, 2 * G, Ho * Wo)

    xh = jnp.stack([xpad[:, :, 2 * TR:H + 1:2 * TR, kw:kw + W:2] for kw in (0, 1, 2)],
                   axis=1)                                         # (N, 3, Cin, R, Wo)
    xh = xh.transpose(0, 3, 1, 2, 4).reshape(N, R, G, Wo)

    wf = w_oihw.astype(jnp.float32)
    wa = jnp.transpose(wf[:, :, 0:2, :], (0, 2, 3, 1)).reshape(Cconv, 2 * G)
    wb = jnp.transpose(wf[:, :, 2, :], (0, 2, 1)).reshape(Cconv, G)

    stats_kernel, norm_kernel = _make_kernels(TR, Wo, Cin, Cconv)

    cparams = pltpu.CompilerParams(
        dimension_semantics=("parallel", "parallel"),   # (N, R) megacore-shardable
        vmem_limit_bytes=48 * 1024 * 1024,              # <= 48 MiB: headroom on v7x (64 MiB)
    )

    xb_spec = pl.BlockSpec((None, 2 * G, M), lambda n, r: (n, 0, r))
    xh_spec = pl.BlockSpec((None, None, G, Wo), lambda n, r: (n, r, 0, 0))
    wa_spec = pl.BlockSpec((Cconv, 2 * G), lambda n, r: (0, 0))
    wb_spec = pl.BlockSpec((Cconv, G), lambda n, r: (0, 0))

    # ---- pass 1: per-(sample, row-tile) per-channel (mean, centered M2) ----
    stats = pl.pallas_call(
        stats_kernel,
        grid=(N, R),
        in_specs=[xb_spec, xh_spec, wa_spec, wb_spec],
        out_specs=pl.BlockSpec((None, None, Cout, 2), lambda n, r: (n, r, 0, 0)),
        out_shape=jax.ShapeDtypeStruct((N, R, Cout, 2), jnp.float32),
        compiler_params=cparams,
    )(xb, xh, wa, wb)

    # ---- fold BatchNorm (training-mode batch stats) into scale/bias (Chan combine) ----
    means = stats[..., 0]                               # (N, R, Cout), equal tile counts
    m2s = stats[..., 1]
    mean = jnp.mean(means, axis=(0, 1))                 # grand mean (exact: equal counts)
    count = jnp.float32(N * Ho * Wo)
    var = (jnp.sum(m2s, axis=(0, 1)) +
           jnp.float32(M) * jnp.sum((means - mean) ** 2, axis=(0, 1))) / count
    scale = gamma.astype(jnp.float32) * jax.lax.rsqrt(var + BN_EPS)
    bias = beta.astype(jnp.float32) - mean * scale

    # ---- pass 2: recompute conv+pool, apply scale/bias + PReLU, write NCHW output ----
    out = pl.pallas_call(
        norm_kernel,
        grid=(N, R),
        in_specs=[
            xb_spec, xh_spec, wa_spec, wb_spec,
            pl.BlockSpec((Cout, 1), lambda n, r: (0, 0)),
            pl.BlockSpec((Cout, 1), lambda n, r: (0, 0)),
            pl.BlockSpec((1, 1), lambda n, r: (0, 0),
                         memory_space=pltpu.MemorySpace.SMEM),   # PReLU alpha scalar
        ],
        out_specs=pl.BlockSpec((None, Cout, M), lambda n, r: (n, 0, r)),
        out_shape=jax.ShapeDtypeStruct((N, Cout, Ho * Wo), jnp.float32),
        compiler_params=cparams,
    )(xb, xh, wa, wb,
      scale.reshape(Cout, 1), bias.reshape(Cout, 1),
      alpha.reshape(1, 1).astype(jnp.float32))

    return out.reshape(N, Cout, Ho, Wo)                 # free split of the pixel axis


def _reference(x, w, gamma, beta, alpha):
    """Pure-JAX reference matching the PyTorch forward (training-mode BatchNorm)."""
    main = jax.lax.conv_general_dilated(
        x, w, window_strides=(2, 2), padding=((1, 1), (1, 1)),
        dimension_numbers=("NCHW", "OIHW", "NCHW"))
    ext = jax.lax.reduce_window(x, -jnp.inf, jax.lax.max,
                                (1, 1, 2, 2), (1, 1, 2, 2), "VALID")
    out = jnp.concatenate([main, ext], axis=1)
    mean = out.mean(axis=(0, 2, 3), keepdims=True)
    var = ((out - mean) ** 2).mean(axis=(0, 2, 3), keepdims=True)
    g = gamma.reshape(1, -1, 1, 1)
    b = beta.reshape(1, -1, 1, 1)
    normed = (out - mean) / jnp.sqrt(var + BN_EPS) * g + b
    return jnp.where(normed >= 0, normed, alpha[0] * normed)


if __name__ == "__main__":
    # InitialBlock(input_ch=3, output_ch=16, bias=False, relu=False)
    N, Cin, H, W = 2, 3, 16, 16
    Cout = 16
    Cconv = Cout - 3

    key = jax.random.PRNGKey(0)
    kx, kw = jax.random.split(key)
    x = jax.random.normal(kx, (N, Cin, H, W), dtype=jnp.float32)
    w = jax.random.normal(kw, (Cconv, Cin, 3, 3), dtype=jnp.float32) * 0.1
    gamma = jnp.ones((Cout,), jnp.float32)        # BatchNorm2d default weight
    beta = jnp.zeros((Cout,), jnp.float32)        # BatchNorm2d default bias
    alpha = jnp.full((1,), 0.25, jnp.float32)     # PReLU default slope

    out = initial_block(x, w, gamma, beta, alpha)
    out = jax.block_until_ready(out)

    ref = _reference(x, w, gamma, beta, alpha)
    np.testing.assert_allclose(np.asarray(out), np.asarray(ref), rtol=1e-3, atol=1e-3)

    print("KERNEL_OK")
</pallas_src>

<mosaic_0001>
module attributes {stable_mosaic.version = 11 : i64} {
  func.func @stats_kernel(%arg0: i32, %arg1: i32, %arg2: memref<1x18x64xf32, #tpu.memory_space<vmem>>, %arg3: memref<1x1x9x8xf32, #tpu.memory_space<vmem>>, %arg4: memref<13x18xf32, #tpu.memory_space<vmem>>, %arg5: memref<13x9xf32, #tpu.memory_space<vmem>>, %arg6: memref<1x1x16x2xf32, #tpu.memory_space<vmem>>) attributes {dimension_semantics = [#tpu.dimension_semantics<parallel>, #tpu.dimension_semantics<parallel>], iteration_bounds = array<i64: 2, 1>, scalar_prefetch = 0 : i64, scratch_operands = 0 : i64, tpu.core_type = #tpu.core_type<tc>, window_params = [{transform_indices = @transform_0, window_bounds = array<i64: 1, 18, 64>}, {transform_indices = @transform_1, window_bounds = array<i64: 1, 1, 9, 8>}, {pipeline_mode = #tpu.pipeline_mode<synchronous>, transform_indices = @transform_2, window_bounds = array<i64: 13, 18>}, {pipeline_mode = #tpu.pipeline_mode<synchronous>, transform_indices = @transform_3, window_bounds = array<i64: 13, 9>}, {transform_indices = @transform_4, window_bounds = array<i64: 1, 1, 16, 2>}]} {
    %c0 = arith.constant 0 : index
    %c0_0 = arith.constant 0 : index
    %c0_1 = arith.constant 0 : index
    %0 = vector.load %arg2[%c0, %c0_0, %c0_1] : memref<1x18x64xf32, #tpu.memory_space<vmem>>, vector<1x18x64xf32>
    %1 = vector.shape_cast %0 : vector<1x18x64xf32> to vector<18x64xf32>
    %2 = vector.extract_strided_slice %1 {offsets = [0, 8], sizes = [9, 56], strides = [1, 1]} : vector<18x64xf32> to vector<9x56xf32>
    %c0_2 = arith.constant 0 : index
    %c0_3 = arith.constant 0 : index
    %c0_4 = arith.constant 0 : index
    %c0_5 = arith.constant 0 : index
    %3 = vector.load %arg3[%c0_2, %c0_3, %c0_4, %c0_5] : memref<1x1x9x8xf32, #tpu.memory_space<vmem>>, vector<1x1x9x8xf32>
    %4 = vector.shape_cast %3 : vector<1x1x9x8xf32> to vector<9x8xf32>
    %5 = tpu.concatenate %2, %4 in 1 : vector<9x56xf32>, vector<9x8xf32> -> vector<9x64xf32>
    %c0_6 = arith.constant 0 : index
    %c0_7 = arith.constant 0 : index
    %6 = vector.load %arg4[%c0_6, %c0_7] : memref<13x18xf32, #tpu.memory_space<vmem>>, vector<13x18xf32>
    %cst = arith.constant dense<0.000000e+00> : vector<13x64xf32>
    %7 = tpu.matmul %6, %1, %cst {dimension_numbers = #tpu.dot_dimension_numbers<[1], [0], [0], [1], [0, 0, 1, 1], [], []>} : vector<13x18xf32>, vector<18x64xf32>, vector<13x64xf32> -> vector<13x64xf32>
    %c0_8 = arith.constant 0 : index
    %c0_9 = arith.constant 0 : index
    %8 = vector.load %arg5[%c0_8, %c0_9] : memref<13x9xf32, #tpu.memory_space<vmem>>, vector<13x9xf32>
    %cst_10 = arith.constant dense<0.000000e+00> : vector<13x64xf32>
    %9 = tpu.matmul %8, %5, %cst_10 {dimension_numbers = #tpu.dot_dimension_numbers<[1], [0], [0], [1], [0, 0, 1, 1], [], []>} : vector<13x9xf32>, vector<9x64xf32>, vector<13x64xf32> -> vector<13x64xf32>
    %10 = arith.addf %7, %9 : vector<13x64xf32>
    %11 = vector.extract_strided_slice %1 {offsets = [12, 0], sizes = [3, 64], strides = [1, 1]} : vector<18x64xf32> to vector<3x64xf32>
    %12 = vector.extract_strided_slice %1 {offsets = [15, 0], sizes = [3, 64], strides = [1, 1]} : vector<18x64xf32> to vector<3x64xf32>
    %13 = vector.extract_strided_slice %5 {offsets = [3, 0], sizes = [3, 64], strides = [1, 1]} : vector<9x64xf32> to vector<3x64xf32>
    %14 = vector.extract_strided_slice %5 {offsets = [6, 0], sizes = [3, 64], strides = [1, 1]} : vector<9x64xf32> to vector<3x64xf32>
    %15 = arith.maximumf %11, %12 : vector<3x64xf32>
    %16 = arith.maximumf %13, %14 : vector<3x64xf32>
    %17 = arith.maximumf %15, %16 : vector<3x64xf32>
    %cst_11 = arith.constant dense<0.000000e+00> : vector<13xf32>
    %18 = vector.multi_reduction <add>, %10, %cst_11 [1] : vector<13x64xf32> to vector<13xf32>
    %19 = vector.shape_cast %18 : vector<13xf32> to vector<13x1xf32>
    %cst_12 = arith.constant 1.562500e-02 : f32
    %20 = vector.broadcast %cst_12 : f32 to vector<13x1xf32>
    %21 = arith.mulf %19, %20 : vector<13x1xf32>
    %cst_13 = arith.constant dense<0.000000e+00> : vector<3xf32>
    %22 = vector.multi_reduction <add>, %17, %cst_13 [1] : vector<3x64xf32> to vector<3xf32>
    %23 = vector.shape_cast %22 : vector<3xf32> to vector<3x1xf32>
    %cst_14 = arith.constant 1.562500e-02 : f32
    %24 = vector.broadcast %cst_14 : f32 to vector<3x1xf32>
    %25 = arith.mulf %23, %24 : vector<3x1xf32>
    %c0_15 = arith.constant 0 : index
    %c0_16 = arith.constant 0 : index
    %c0_17 = arith.constant 0 : index
    %c0_18 = arith.constant 0 : index
    %26 = vector.load %arg6[%c0_15, %c0_16, %c0_17, %c0_18] : memref<1x1x16x2xf32, #tpu.memory_space<vmem>>, vector<1x1x13x1xf32>
    %27 = vector.shape_cast %26 : vector<1x1x13x1xf32> to vector<13x1xf32>
    %28 = vector.shape_cast %21 : vector<13x1xf32> to vector<1x1x13x1xf32>
    tpu.vector_store %arg6[%c0_15, %c0_16, %c0_17, %c0_18], %28 {strides = array<i32>} : memref<1x1x16x2xf32, #tpu.memory_space<vmem>>, vector<1x1x13x1xf32>,
    %c0_19 = arith.constant 0 : index
    %c0_20 = arith.constant 0 : index
    %c13 = arith.constant 13 : index
    %c0_21 = arith.constant 0 : index
    %29 = vector.load %arg6[%c0_19, %c0_20, %c13, %c0_21] : memref<1x1x16x2xf32, #tpu.memory_space<vmem>>, vector<1x1x3x1xf32>
    %30 = vector.shape_cast %29 : vector<1x1x3x1xf32> to vector<3x1xf32>
    %31 = vector.shape_cast %25 : vector<3x1xf32> to vector<1x1x3x1xf32>
    tpu.vector_store %arg6[%c0_19, %c0_20, %c13, %c0_21], %31 {strides = array<i32>} : memref<1x1x16x2xf32, #tpu.memory_space<vmem>>, vector<1x1x3x1xf32>,
    %32 = vector.broadcast %21 : vector<13x1xf32> to vector<13x64xf32>
    %33 = arith.subf %10, %32 : vector<13x64xf32>
    %34 = arith.mulf %33, %33 : vector<13x64xf32>
    %cst_22 = arith.constant dense<0.000000e+00> : vector<13xf32>
    %35 = vector.multi_reduction <add>, %34, %cst_22 [1] : vector<13x64xf32> to vector<13xf32>
    %36 = vector.shape_cast %35 : vector<13xf32> to vector<13x1xf32>
    %c0_23 = arith.constant 0 : index
    %c0_24 = arith.constant 0 : index
    %c0_25 = arith.constant 0 : index
    %c1 = arith.constant 1 : index
    %37 = vector.load %arg6[%c0_23, %c0_24, %c0_25, %c1] : memref<1x1x16x2xf32, #tpu.memory_space<vmem>>, vector<1x1x13x1xf32>
    %38 = vector.shape_cast %37 : vector<1x1x13x1xf32> to vector<13x1xf32>
    %39 = vector.shape_cast %36 : vector<13x1xf32> to vector<1x1x13x1xf32>
    tpu.vector_store %arg6[%c0_23, %c0_24, %c0_25, %c1], %39 {strides = array<i32>} : memref<1x1x16x2xf32, #tpu.memory_space<vmem>>, vector<1x1x13x1xf32>,
    %40 = vector.broadcast %25 : vector<3x1xf32> to vector<3x64xf32>
    %41 = arith.subf %17, %40 : vector<3x64xf32>
    %42 = arith.mulf %41, %41 : vector<3x64xf32>
    %cst_26 = arith.constant dense<0.000000e+00> : vector<3xf32>
    %43 = vector.multi_reduction <add>, %42, %cst_26 [1] : vector<3x64xf32> to vector<3xf32>
    %44 = vector.shape_cast %43 : vector<3xf32> to vector<3x1xf32>
    %c0_27 = arith.constant 0 : index
    %c0_28 = arith.constant 0 : index
    %c13_29 = arith.constant 13 : index
    %c1_30 = arith.constant 1 : index
    %45 = vector.load %arg6[%c0_27, %c0_28, %c13_29, %c1_30] : memref<1x1x16x2xf32, #tpu.memory_space<vmem>>, vector<1x1x3x1xf32>
    %46 = vector.shape_cast %45 : vector<1x1x3x1xf32> to vector<3x1xf32>
    %47 = vector.shape_cast %44 : vector<3x1xf32> to vector<1x1x3x1xf32>
    tpu.vector_store %arg6[%c0_27, %c0_28, %c13_29, %c1_30], %47 {strides = array<i32>} : memref<1x1x16x2xf32, #tpu.memory_space<vmem>>, vector<1x1x3x1xf32>,
    return
  }
  func.func @transform_0(%arg0: i32, %arg1: i32) -> (i32, i32, i32) {
    %c0_i32 = arith.constant 0 : i32
    %c0_i32_0 = arith.constant 0 : i32
    return %arg0, %c0_i32, %arg1 : i32, i32, i32
  }
  func.func @transform_1(%arg0: i32, %arg1: i32) -> (i32, i32, i32, i32) {
    %c0_i32 = arith.constant 0 : i32
    %c0_i32_0 = arith.constant 0 : i32
    %c0_i32_1 = arith.constant 0 : i32
    return %arg0, %arg1, %c0_i32, %c0_i32_0 : i32, i32, i32, i32
  }
  func.func @transform_2(%arg0: i32, %arg1: i32) -> (i32, i32) {
    %c0_i32 = arith.constant 0 : i32
    %c0_i32_0 = arith.constant 0 : i32
    %c0_i32_1 = arith.constant 0 : i32
    return %c0_i32, %c0_i32_0 : i32, i32
  }
  func.func @transform_3(%arg0: i32, %arg1: i32) -> (i32, i32) {
    %c0_i32 = arith.constant 0 : i32
    %c0_i32_0 = arith.constant 0 : i32
    %c0_i32_1 = arith.constant 0 : i32
    return %c0_i32, %c0_i32_0 : i32, i32
  }
  func.func @transform_4(%arg0: i32, %arg1: i32) -> (i32, i32, i32, i32) {
    %c0_i32 = arith.constant 0 : i32
    %c0_i32_0 = arith.constant 0 : i32
    %c0_i32_1 = arith.constant 0 : i32
    return %arg0, %arg1, %c0_i32, %c0_i32_0 : i32, i32, i32, i32
  }
}

module attributes {stable_mosaic.version = 11 : i64} {
  func.func @norm_kernel(%arg0: i32, %arg1: i32, %arg2: memref<1x18x64xf32, #tpu.memory_space<vmem>>, %arg3: memref<1x1x9x8xf32, #tpu.memory_space<vmem>>, %arg4: memref<13x18xf32, #tpu.memory_space<vmem>>, %arg5: memref<13x9xf32, #tpu.memory_space<vmem>>, %arg6: memref<16x1xf32, #tpu.memory_space<vmem>>, %arg7: memref<16x1xf32, #tpu.memory_space<vmem>>, %arg8: memref<1x1xf32, #tpu.memory_space<smem>>, %arg9: memref<1x16x64xf32, #tpu.memory_space<vmem>>) attributes {dimension_semantics = [#tpu.dimension_semantics<parallel>, #tpu.dimension_semantics<parallel>], iteration_bounds = array<i64: 2, 1>, scalar_prefetch = 0 : i64, scratch_operands = 0 : i64, tpu.core_type = #tpu.core_type<tc>, window_params = [{transform_indices = @transform_0, window_bounds = array<i64: 1, 18, 64>}, {transform_indices = @transform_1, window_bounds = array<i64: 1, 1, 9, 8>}, {pipeline_mode = #tpu.pipeline_mode<synchronous>, transform_indices = @transform_2, window_bounds = array<i64: 13, 18>}, {pipeline_mode = #tpu.pipeline_mode<synchronous>, transform_indices = @transform_3, window_bounds = array<i64: 13, 9>}, {pipeline_mode = #tpu.pipeline_mode<synchronous>, transform_indices = @transform_4, window_bounds = array<i64: 16, 1>}, {pipeline_mode = #tpu.pipeline_mode<synchronous>, transform_indices = @transform_5, window_bounds = array<i64: 16, 1>}, {transform_indices = @transform_6, window_bounds = array<i64: 1, 1>}, {transform_indices = @transform_7, window_bounds = array<i64: 1, 16, 64>}]} {
    %c0 = arith.constant 0 : index
    %c0_0 = arith.constant 0 : index
    %c0_1 = arith.constant 0 : index
    %0 = vector.load %arg2[%c0, %c0_0, %c0_1] : memref<1x18x64xf32, #tpu.memory_space<vmem>>, vector<1x18x64xf32>
    %1 = vector.shape_cast %0 : vector<1x18x64xf32> to vector<18x64xf32>
    %2 = vector.extract_strided_slice %1 {offsets = [0, 8], sizes = [9, 56], strides = [1, 1]} : vector<18x64xf32> to vector<9x56xf32>
    %c0_2 = arith.constant 0 : index
    %c0_3 = arith.constant 0 : index
    %c0_4 = arith.constant 0 : index
    %c0_5 = arith.constant 0 : index
    %3 = vector.load %arg3[%c0_2, %c0_3, %c0_4, %c0_5] : memref<1x1x9x8xf32, #tpu.memory_space<vmem>>, vector<1x1x9x8xf32>
    %4 = vector.shape_cast %3 : vector<1x1x9x8xf32> to vector<9x8xf32>
    %5 = tpu.concatenate %2, %4 in 1 : vector<9x56xf32>, vector<9x8xf32> -> vector<9x64xf32>
    %c0_6 = arith.constant 0 : index
    %c0_7 = arith.constant 0 : index
    %6 = vector.load %arg4[%c0_6, %c0_7] : memref<13x18xf32, #tpu.memory_space<vmem>>, vector<13x18xf32>
    %cst = arith.constant dense<0.000000e+00> : vector<13x64xf32>
    %7 = tpu.matmul %6, %1, %cst {dimension_numbers = #tpu.dot_dimension_numbers<[1], [0], [0], [1], [0, 0, 1, 1], [], []>} : vector<13x18xf32>, vector<18x64xf32>, vector<13x64xf32> -> vector<13x64xf32>
    %c0_8 = arith.constant 0 : index
    %c0_9 = arith.constant 0 : index
    %8 = vector.load %arg5[%c0_8, %c0_9] : memref<13x9xf32, #tpu.memory_space<vmem>>, vector<13x9xf32>
    %cst_10 = arith.constant dense<0.000000e+00> : vector<13x64xf32>
    %9 = tpu.matmul %8, %5, %cst_10 {dimension_numbers = #tpu.dot_dimension_numbers<[1], [0], [0], [1], [0, 0, 1, 1], [], []>} : vector<13x9xf32>, vector<9x64xf32>, vector<13x64xf32> -> vector<13x64xf32>
    %10 = arith.addf %7, %9 : vector<13x64xf32>
    %11 = vector.extract_strided_slice %1 {offsets = [12, 0], sizes = [3, 64], strides = [1, 1]} : vector<18x64xf32> to vector<3x64xf32>
    %12 = vector.extract_strided_slice %1 {offsets = [15, 0], sizes = [3, 64], strides = [1, 1]} : vector<18x64xf32> to vector<3x64xf32>
    %13 = vector.extract_strided_slice %5 {offsets = [3, 0], sizes = [3, 64], strides = [1, 1]} : vector<9x64xf32> to vector<3x64xf32>
    %14 = vector.extract_strided_slice %5 {offsets = [6, 0], sizes = [3, 64], strides = [1, 1]} : vector<9x64xf32> to vector<3x64xf32>
    %15 = arith.maximumf %11, %12 : vector<3x64xf32>
    %16 = arith.maximumf %13, %14 : vector<3x64xf32>
    %17 = arith.maximumf %15, %16 : vector<3x64xf32>
    %c0_11 = arith.constant 0 : index
    %c0_12 = arith.constant 0 : index
    %18 = memref.load %arg8[%c0_11, %c0_12] : memref<1x1xf32, #tpu.memory_space<smem>>
    %c0_13 = arith.constant 0 : index
    %c0_14 = arith.constant 0 : index
    %19 = vector.load %arg6[%c0_13, %c0_14] : memref<16x1xf32, #tpu.memory_space<vmem>>, vector<13x1xf32>
    %20 = vector.broadcast %19 : vector<13x1xf32> to vector<13x64xf32>
    %21 = arith.mulf %10, %20 : vector<13x64xf32>
    %c0_15 = arith.constant 0 : index
    %c0_16 = arith.constant 0 : index
    %22 = vector.load %arg7[%c0_15, %c0_16] : memref<16x1xf32, #tpu.memory_space<vmem>>, vector<13x1xf32>
    %23 = vector.broadcast %22 : vector<13x1xf32> to vector<13x64xf32>
    %24 = arith.addf %21, %23 : vector<13x64xf32>
    %cst_17 = arith.constant 0.000000e+00 : f32
    %25 = vector.broadcast %cst_17 : f32 to vector<13x64xf32>
    %26 = arith.cmpf oge, %24, %25 : vector<13x64xf32>
    %27 = vector.broadcast %18 : f32 to vector<13x64xf32>
    %28 = arith.mulf %27, %24 : vector<13x64xf32>
    %29 = arith.select %26, %24, %28 : vector<13x64xi1>, vector<13x64xf32>
    %c13 = arith.constant 13 : index
    %c0_18 = arith.constant 0 : index
    %30 = vector.load %arg6[%c13, %c0_18] : memref<16x1xf32, #tpu.memory_space<vmem>>, vector<3x1xf32>
    %31 = vector.broadcast %30 : vector<3x1xf32> to vector<3x64xf32>
    %32 = arith.mulf %17, %31 : vector<3x64xf32>
    %c13_19 = arith.constant 13 : index
    %c0_20 = arith.constant 0 : index
    %33 = vector.load %arg7[%c13_19, %c0_20] : memref<16x1xf32, #tpu.memory_space<vmem>>, vector<3x1xf32>
    %34 = vector.broadcast %33 : vector<3x1xf32> to vector<3x64xf32>
    %35 = arith.addf %32, %34 : vector<3x64xf32>
    %cst_21 = arith.constant 0.000000e+00 : f32
    %36 = vector.broadcast %cst_21 : f32 to vector<3x64xf32>
    %37 = arith.cmpf oge, %35, %36 : vector<3x64xf32>
    %38 = vector.broadcast %18 : f32 to vector<3x64xf32>
    %39 = arith.mulf %38, %35 : vector<3x64xf32>
    %40 = arith.select %37, %35, %39 : vector<3x64xi1>, vector<3x64xf32>
    %c0_22 = arith.constant 0 : index
    %c0_23 = arith.constant 0 : index
    %c0_24 = arith.constant 0 : index
    %41 = vector.load %arg9[%c0_22, %c0_23, %c0_24] : memref<1x16x64xf32, #tpu.memory_space<vmem>>, vector<1x13x64xf32>
    %42 = vector.shape_cast %41 : vector<1x13x64xf32> to vector<13x64xf32>
    %43 = vector.shape_cast %29 : vector<13x64xf32> to vector<1x13x64xf32>
    tpu.vector_store %arg9[%c0_22, %c0_23, %c0_24], %43 {strides = array<i32>} : memref<1x16x64xf32, #tpu.memory_space<vmem>>, vector<1x13x64xf32>,
    %c0_25 = arith.constant 0 : index
    %c13_26 = arith.constant 13 : index
    %c0_27 = arith.constant 0 : index
    %44 = vector.load %arg9[%c0_25, %c13_26, %c0_27] : memref<1x16x64xf32, #tpu.memory_space<vmem>>, vector<1x3x64xf32>
    %45 = vector.shape_cast %44 : vector<1x3x64xf32> to vector<3x64xf32>
    %46 = vector.shape_cast %40 : vector<3x64xf32> to vector<1x3x64xf32>
    tpu.vector_store %arg9[%c0_25, %c13_26, %c0_27], %46 {strides = array<i32>} : memref<1x16x64xf32, #tpu.memory_space<vmem>>, vector<1x3x64xf32>,
    return
  }
  func.func @transform_0(%arg0: i32, %arg1: i32) -> (i32, i32, i32) {
    %c0_i32 = arith.constant 0 : i32
    %c0_i32_0 = arith.constant 0 : i32
    return %arg0, %c0_i32, %arg1 : i32, i32, i32
  }
  func.func @transform_1(%arg0: i32, %arg1: i32) -> (i32, i32, i32, i32) {
    %c0_i32 = arith.constant 0 : i32
    %c0_i32_0 = arith.constant 0 : i32
    %c0_i32_1 = arith.constant 0 : i32
    return %arg0, %arg1, %c0_i32, %c0_i32_0 : i32, i32, i32, i32
  }
  func.func @transform_2(%arg0: i32, %arg1: i32) -> (i32, i32) {
    %c0_i32 = arith.constant 0 : i32
    %c0_i32_0 = arith.constant 0 : i32
    %c0_i32_1 = arith.constant 0 : i32
    return %c0_i32, %c0_i32_0 : i32, i32
  }
  func.func @transform_3(%arg0: i32, %arg1: i32) -> (i32, i32) {
    %c0_i32 = arith.constant 0 : i32
    %c0_i32_0 = arith.constant 0 : i32
    %c0_i32_1 = arith.constant 0 : i32
    return %c0_i32, %c0_i32_0 : i32, i32
  }
  func.func @transform_4(%arg0: i32, %arg1: i32) -> (i32, i32) {
    %c0_i32 = arith.constant 0 : i32
    %c0_i32_0 = arith.constant 0 : i32
    %c0_i32_1 = arith.constant 0 : i32
    return %c0_i32, %c0_i32_0 : i32, i32
  }
  func.func @transform_5(%arg0: i32, %arg1: i32) -> (i32, i32) {
    %c0_i32 = arith.constant 0 : i32
    %c0_i32_0 = arith.constant 0 : i32
    %c0_i32_1 = arith.constant 0 : i32
    return %c0_i32, %c0_i32_0 : i32, i32
  }
  func.func @transform_6(%arg0: i32, %arg1: i32) -> (i32, i32) {
    %c0_i32 = arith.constant 0 : i32
    %c0_i32_0 = arith.constant 0 : i32
    %c0_i32_1 = arith.constant 0 : i32
    return %c0_i32, %c0_i32_0 : i32, i32
  }
  func.func @transform_7(%arg0: i32, %arg1: i32) -> (i32, i32, i32) {
    %c0_i32 = arith.constant 0 : i32
    %c0_i32_0 = arith.constant 0 : i32
    return %arg0, %c0_i32, %arg1 : i32, i32, i32
  }
}

</mosaic_0001>

<bundles_post_ra>
// kernel: initial_block.3
= control target key start
LH: loop header
LB: loop body
LE: loop exit
PB: predicated region body
PF: predicated region fallthrough
CT: control target
= control target key end

     0   :  { %s885_s26 = smov 0   ;;  %s887_s27 = smov 0   ;;  %s965_s0 = inlined_call_operand.vmem [shape: f32[2,18,64], index: 0, kind: input, shape index: {}]   ;;  %s966_s1 = inlined_call_operand.vmem [shape: f32[2,1,9,8], index: 1, kind: input, shape index: {}]   ;;  %s967_s2 = inlined_call_operand.vmem [shape: f32[13,18], index: 2, kind: input, shape index: {}]   ;;  %s968_s3 = inlined_call_operand.vmem [shape: f32[13,9], index: 3, kind: input, shape index: {}]   ;;  %s969_s4 = inlined_call_operand.vmem [shape: f32[16,1], index: 4, kind: input, shape index: {}]   ;;  %s970_s5 = inlined_call_operand.vmem [shape: f32[16,1], index: 5, kind: input, shape index: {}]   ;;  %s971_s6 = inlined_call_operand.<no memory space> [shape: f32[1,1], index: 6, kind: input, shape index: {}]   ;;  %s972_s7 = inlined_call_operand.vmem [shape: f32[2,16,64], index: 7, kind: output, shape index: {}]  }
   0x1   :  { %12 = sst [smem:[#allocation2]] %s971_s6  ;;  %s889_s28 = smov 0  }
   0x2 LB: > { %s30_s6 = sadd.s32 1, %s832_s27  ;;  %p730_p0 = scmp.ge.s32.totalorder %s836_s28, 1  ;;  %s836_s28 = sphi %s889_s28, %s18_s28   ;;  %s832_s27 = sphi %s887_s27, %s974_s27   ;;  %s828_s26 = sphi %s885_s26, %s973_s26  }
   0x3   : > { %p32_p1 = scmp.ge.s32.totalorder %s30_s6, 2  ;;  %p273_p2 = scmp.lt.s32.totalorder %s836_s28, 3 }
   0x5   : > { %s976_s6 = smov (%p32_p1, %s30_s6), 0  ;;  %p274_p3 = pnand %p730_p0, %p273_p2 }
   0x6   : > { %p320_p4 = scmp.lt.s32.totalorder (!%p274_p3), %s828_s26, 1  ;;  %v838_v0 = vmov (!%p274_p3), 0   ;;  %v369_v1 = vld [vmem:[%s967_s2] sm:$0xff] (!%p274_p3)  ;;  %vm459_vm0 = vcmask (!%p274_p3), 146432   ;;  %vm373_vm1 = vcmask (!%p274_p3), 72704   ;;  %s839_s18 = smov (!%p274_p3), 56  }
   0x7   : > { %277 = sbr.rel (%p274_p3) target bundleno = 368 (0x170), region = 48  ;;  %812 = vset.pattern.permute.xlu0 (!%p274_p3), %v838_v0  ;;  %813 = vset.pattern.permute.xlu1 (!%p274_p3), %v838_v0  ;;  %v371_v2 = vld [vmem:[%s968_s3] sm:$0xff] (!%p274_p3)  ;;  %s840_s19 = smov (!%p274_p3), 120   ;;  %vm545_vm2 = vcmask (!%p274_p3), 1044480   ;;  %vm466_vm3 = vcmask (!%p274_p3), 1041408   ;;  %vm366_vm4 = vcmask (!%p274_p3), 457728  }
   0x8   : > { %768 = vmatprep.mubr.msk.f32.mxu0 (!%p274_p3), %vm459_vm0, %v369_v1  ;;  %759 = vmatprep.mubr.msk.f32.mxu1 (!%p274_p3), %vm373_vm1, %v371_v2  ;;  %v597_v13 = vld [vmem:[%s969_s4 + $0xd] sm:$0x7] (!%p274_p3)  ;;  %v370_v14 = vld [vmem:[%s967_s2 + $0x8] sm:$0x1f] (!%p274_p3)  ;;  %v562_v16 = vld [vmem:[%s969_s4] sm:$0xff] (!%p274_p3)  ;;  %vm380_vm5 = vcmask (!%p274_p3), 1040384  }
   0x9   : > { %v605_v15 = vld [vmem:[%s970_s5 + $0xd] sm:$0x7] (!%p274_p3)  ;;  %v577_v17 = vld [vmem:[%s970_s5 + $0x8] sm:$0x1f] (!%p274_p3)  ;;  %v576_v19 = vld [vmem:[%s970_s5] sm:$0xff] (!%p274_p3)  ;;  %vm841_vm6 = vmmov (!%p274_p3), 1  }
   0xa   : > { %v563_v18 = vld [vmem:[%s969_s4 + $0x8] sm:$0x1f] (!%p274_p3)  ;;  %vm772_vm7 = vmpackc.low (!%p274_p3), %vm380_vm5, %vm841_vm6  ;;  %vm620_vm8 = vcmask (!%p274_p3), 522244   ;;  %vm618_vm11 = vcmask (!%p274_p3), 520192   ;;  %vm616_vm13 = vcmask (!%p274_p3), 523264  }
   0xb   : > { %v372_v28 = vld [vmem:[%s968_s3 + $0x8] sm:$0x1f] (!%p274_p3) }
   0xe   : > { %s978_s26 = smov (!%p320_p4, %s828_s26), 1 }
   0xf   : > { %s744_s10 = sshll.u32 %s978_s26, 4  ;;  %s783_s11 = smul.u32 24, %s978_s26 }
  0x10   : > { %s336_s14 = scalar_lea.vmem %s966_s1, %s744_s10  ;;  %s344_s20 = scalar_lea.vmem %s972_s7, %s744_s10 }
  0x11   : > { %v348_v3 = vld [vmem:[%s336_s14] sm:$0xff]  ;;  %s327_s17 = scalar_lea.vmem %s965_s0, %s783_s11  ;;  %v349_v7 = vld [vmem:[%s336_s14 + $0x8] sm:$0x1] }
  0x12   : > { %360 = vrot.lane.b32.xlu1 %v348_v3, %s839_s18  ;;  %v345_v4 = vld [vmem:[%s327_s17] sm:$0xff]  ;;  %v346_v5 = vld [vmem:[%s327_s17 + $0x8] sm:$0xff]  ;;  %v347_v6 = vld [vmem:[%s327_s17 + $0x10] sm:$0x3]  ;;  %s561_s17 = sld [smem:[#allocation2]] }
  0x13   : > { %352 = vrot.lane.b32.xlu0 %v345_v4, %s840_s19  ;;  %v546_v8 = vrot.slane %v346_v5, 3  ;;  %v777_v9 = vpack.c.bf16 %v346_v5, %v345_v4  ;;  %v547_v10 = vrot.slane %v347_v6, 3 }
  0x15   : > { %778 = vmatprep.subr.bf16.mxu0 %v777_v9  ;;  %v548_v11 = vsel %vm545_vm2, %v546_v8, %v547_v10 }
  0x16   : > { %362 = vrot.lane.b32.xlu1 %v349_v7, %s839_s18  ;;  %780 = vmatpush3.bf16.msra.mxu0 %v777_v9  ;;  %v550_v12 = vmax.f32 %v346_v5, %v548_v11 }
  0x17   : > { %354 = vrot.lane.b32.xlu0 %v346_v5, %s840_s19  ;;  %766 = vmatprep.subr.msk.mxu0 %vm466_vm3, %v347_v6 }
  0x18   : > { %v592_v39 = vstv %s561_s17 }
  0x1a   : > { %767 = vmatpush3.msk.msra.mxu0 %vm466_vm3, %v347_v6  ;;  %566 = vperm.xlu1 %813, %v562_v16  }
  0x1b   : > { %600 = vperm.xlu0 %812, %v597_v13   ;;  %769 = vmatmul.mubr.msk.f32.vlgmr.msra.gmra.mrb[0].mxu0 %vm459_vm0, %v370_v14 }
  0x1e   : > { %571 = vperm.xlu1 %813, %v563_v18  }
  0x1f   : > { %608 = vperm.xlu0 %812, %v605_v15  }
  0x22   : > { %580 = vperm.xlu1 %813, %v576_v19  }
  0x23   : > { %585 = vperm.xlu0 %812, %v577_v17  }
  0x84   : > { %v361_v20 = vpop.permute.xlu1 %360 }
  0x85   : > { %v353_v21 = vpop.permute.xlu0 %352 }
  0x86   : > { %v367_v24 = vsel %vm366_vm4, %v353_v21, %v361_v20 }
  0x87   : > { %v552_v29 = vrot.slane %v367_v24, 3 }
  0x88   : > { %v363_v22 = vpop.permute.xlu1 %362 }
  0x89   : > { %v355_v23 = vpop.permute.xlu0 %354 }
  0x8a   : > { %v368_v25 = vsel %vm366_vm4, %v355_v23, %v363_v22 }
  0x8b   : > { %v771_v26 = vpack.c.bf16 %v368_v25, %v367_v24  ;;  %v553_v27 = vrot.slane %v368_v25, 3 }
  0x8d   : > { %773 = vmatprep.subr.msk.bf16.mxu1 %vm772_vm7, %v771_v26  ;;  %v554_v30 = vsel %vm545_vm2, %v552_v29, %v553_v27 }
  0x8e   : > { %776 = vmatpush3.bf16.msk.msra.mxu1 %vm772_vm7, %v771_v26  ;;  %v556_v31 = vmax.f32 %v367_v24, %v554_v30 }
  0x90   : > { %v558_v32 = vrot.slane %v556_v31, 7 }
  0x91   : > { %760 = vmatmul.mubr.msk.f32.vlgmr.msra.gmra.mrb[0].mxu1 %vm373_vm1, %v372_v28 }
  0x92   : > { %v560_v35 = vmax.f32 %v550_v12, %v558_v32 }
  0x99   : > { %v567_v45 = vpop.permute.xlu1 %566 }
  0x9a   : > { %v601_v33 = vpop.permute.xlu0 %600 }
  0x9b   : > { %v602_v34 = vrot.slane %v601_v33, 4 }
  0x9d   : > { %v604_v37 = vmul.f32 %v602_v34, %v560_v35  ;;  %v572_v46 = vpop.permute.xlu1 %571 }
  0x9e   : > { %v609_v36 = vpop.permute.xlu0 %608 }
  0x9f   : > { %v610_v38 = vrot.slane %v609_v36, 4 }
  0xa1   : > { %v612_v40 = vadd.f32 %v610_v38, %v604_v37  ;;  %v581_v54 = vpop.permute.xlu1 %580 }
  0xa2   : > { %v586_v52 = vpop.permute.xlu0 %585 }
  0xa3   : > { %vm613_vm9 = vcmp.ge.f32.partialorder %v612_v40, 0.0  ;;  %v614_v41 = vmul.f32 %v612_v40, %v592_v39 }
  0xa5   : > { %v615_v42 = vsel %vm613_vm9, %v612_v40, %v614_v41 }
  0xa6   : > { %621 = vst.msk [vmem:[%s344_s20 + $0x9] sm:$0x70] %vm620_vm8, %v615_v42 }
  0xee   : > { %v770_v43 = vpop.f32.mrb[0].mxu0 }
  0xef   : > { %v536_v44 = vpop.f32.mrb[1].mxu0 }
 0x164   : > { %v761_v47 = vpop.f32.mrb[0].mxu1 }
 0x165   : > { %v542_v48 = vadd.f32 %v770_v43, %v761_v47  ;;  %v450_v49 = vpop.f32.mrb[1].mxu1 }
 0x166   : > { %v537_v50 = vadd.f32 %v536_v44, %v450_v49 }
 0x167   : > { %v575_v51 = vmul.f32 %v572_v46, %v542_v48 }
 0x168   : > { %v574_v53 = vmul.f32 %v567_v45, %v537_v50 }
 0x169   : > { %v589_v55 = vadd.f32 %v586_v52, %v575_v51 }
 0x16a   : > { %v588_v56 = vadd.f32 %v581_v54, %v574_v53 }
 0x16b   : > { %vm591_vm10 = vcmp.ge.f32.partialorder %v589_v55, 0.0  ;;  %v594_v57 = vmul.f32 %v592_v39, %v589_v55 }
 0x16c   : > { %vm590_vm12 = vcmp.ge.f32.partialorder %v588_v56, 0.0  ;;  %v593_v58 = vmul.f32 %v592_v39, %v588_v56 }
 0x16d   : > { %v596_v59 = vsel %vm591_vm10, %v589_v55, %v594_v57 }
 0x16e   : > { %619 = vst.msk [vmem:[%s344_s20 + $0x8] sm:$0x1f] %vm618_vm11, %v596_v59  ;;  %v595_v60 = vsel %vm590_vm12, %v588_v56, %v593_v58 }
 0x16f   : > { %617 = vst.msk [vmem:[%s344_s20] sm:$0xff] %vm616_vm13, %v595_v60 }
 0x170 PF: > { %s18_s28 = sadd.s32 1, %s836_s28   ;;  %s973_s26 = smov %s832_s27 }
 0x171   : > { %p15_p5 = scmp.ge.s32.totalorder %s18_s28, 4   ;;  %s974_s27 = smov %s976_s6 }
 0x173   :  { %17 = sbr.rel (!%p15_p5) target bundleno = 2 (0x2), region = 81 }

// kernel: initial_block.2
= control target key start
LH: loop header
LB: loop body
LE: loop exit
PB: predicated region body
PF: predicated region fallthrough
CT: control target
= control target key end

     0   :  { %s770_s15 = smov 0   ;;  %s772_s16 = smov 0   ;;  %s846_s0 = inlined_call_operand.vmem [shape: f32[2,18,64], index: 0, kind: input, shape index: {}]   ;;  %s847_s1 = inlined_call_operand.vmem [shape: f32[2,1,9,8], index: 1, kind: input, shape index: {}]   ;;  %s848_s2 = inlined_call_operand.vmem [shape: f32[13,18], index: 2, kind: input, shape index: {}]   ;;  %s849_s3 = inlined_call_operand.vmem [shape: f32[13,9], index: 3, kind: input, shape index: {}]   ;;  %s850_s4 = inlined_call_operand.vmem [shape: f32[2,1,16,2], index: 4, kind: output, shape index: {}]  }
   0x1   :  { %s774_s17 = smov 0  }
   0x2 LB: > { %s26_s18 = sadd.s32 1, %s736_s16  ;;  %p637_p0 = scmp.ge.s32.totalorder %s740_s17, 1  ;;  %s740_s17 = sphi %s774_s17, %s14_s17   ;;  %s736_s16 = sphi %s772_s16, %s852_s16   ;;  %s732_s15 = sphi %s770_s15, %s851_s15  }
   0x3   : > { %p28_p1 = scmp.ge.s32.totalorder %s26_s18, 2  ;;  %p197_p2 = scmp.lt.s32.totalorder %s740_s17, 3 }
   0x5   : > { %s854_s18 = smov (%p28_p1, %s26_s18), 0  ;;  %p198_p3 = pnand %p637_p0, %p197_p2 }
   0x6   : > { %p239_p4 = scmp.lt.s32.totalorder (!%p198_p3), %s732_s15, 1  ;;  %v289_v0 = vld [vmem:[%s848_s2] sm:$0xff] (!%p198_p3)  ;;  %vm379_vm0 = vcmask (!%p198_p3), 146432   ;;  %vm293_vm1 = vcmask (!%p198_p3), 72704   ;;  %s742_s5 = smov (!%p198_p3), 56   ;;  %vm386_vm2 = vcmask (!%p198_p3), 1041408  }
   0x7   : > { %201 = sbr.rel (%p198_p3) target bundleno = 657 (0x291), region = 36  ;;  %v291_v1 = vld [vmem:[%s849_s3] sm:$0xff] (!%p198_p3)  ;;  %675 = vmatprep.mubr.msk.f32.mxu0 (!%p198_p3), %vm379_vm0, %v289_v0  ;;  %s743_s6 = smov (!%p198_p3), 120   ;;  %vm465_vm3 = vcmask (!%p198_p3), 1044480   ;;  %v290_v12 = vld [vmem:[%s848_s2 + $0x8] sm:$0x1f] (!%p198_p3) }
   0x8   : > { %666 = vmatprep.mubr.msk.f32.mxu1 (!%p198_p3), %vm293_vm1, %v291_v1  ;;  %vm286_vm4 = vcmask (!%p198_p3), 457728   ;;  %vm300_vm5 = vcmask (!%p198_p3), 1040384   ;;  %vm744_vm6 = vmmov (!%p198_p3), 1   ;;  %v292_v23 = vld [vmem:[%s849_s3 + $0x8] sm:$0x1f] (!%p198_p3)  ;;  %vm485_vm8 = vcmask (!%p198_p3), 520192  }
   0x9   : > { %vm679_vm7 = vmpackc.low (!%p198_p3), %vm300_vm5, %vm744_vm6  ;;  %vm481_vm9 = vcmask (!%p198_p3), 523264   ;;  %vm491_vm10 = vcmask (!%p198_p3), 522244   ;;  %vm498_vm11 = vcmask (!%p198_p3), 4096   ;;  %vm496_vm12 = vcmask (!%p198_p3), 7168  }
   0xa   : > { %vm500_vm13 = vcmask (!%p198_p3), 6148   ;;  %vm514_vm14 = vcmask (!%p198_p3), 12296   ;;  %vm512_vm15 = vcmask (!%p198_p3), 15368  }
   0xe   : > { %s856_s15 = smov (!%p239_p4, %s732_s15), 1 }
   0xf   : > { %s651_s23 = sshll.u32 %s856_s15, 4  ;;  %s690_s24 = smul.u32 24, %s856_s15 }
  0x10   : > { %s255_s27 = scalar_lea.vmem %s847_s1, %s651_s23  ;;  %s826_s13 = scalar_lea.vmem %s850_s4, %s651_s23 }
  0x11   : > { %v268_v2 = vld [vmem:[%s255_s27] sm:$0xff]  ;;  %s246_s30 = scalar_lea.vmem %s846_s0, %s690_s24  ;;  %v269_v6 = vld [vmem:[%s255_s27 + $0x8] sm:$0x1] }
  0x12   : > { %280 = vrot.lane.b32.xlu1 %v268_v2, %s742_s5  ;;  %v265_v3 = vld [vmem:[%s246_s30] sm:$0xff]  ;;  %v266_v4 = vld [vmem:[%s246_s30 + $0x8] sm:$0xff]  ;;  %v267_v5 = vld [vmem:[%s246_s30 + $0x10] sm:$0x3] }
  0x13   : > { %272 = vrot.lane.b32.xlu0 %v265_v3, %s743_s6  ;;  %v466_v7 = vrot.slane %v266_v4, 3  ;;  %v684_v8 = vpack.c.bf16 %v266_v4, %v265_v3  ;;  %v467_v9 = vrot.slane %v267_v5, 3 }
  0x15   : > { %685 = vmatprep.subr.bf16.mxu0 %v684_v8  ;;  %v468_v10 = vsel %vm465_vm3, %v466_v7, %v467_v9 }
  0x16   : > { %282 = vrot.lane.b32.xlu1 %v269_v6, %s742_s5  ;;  %687 = vmatpush3.bf16.msra.mxu0 %v684_v8  ;;  %v470_v11 = vmax.f32 %v266_v4, %v468_v10 }
  0x17   : > { %274 = vrot.lane.b32.xlu0 %v266_v4, %s743_s6  ;;  %673 = vmatprep.subr.msk.mxu0 %vm386_vm2, %v267_v5 }
  0x1a   : > { %674 = vmatpush3.msk.msra.mxu0 %vm386_vm2, %v267_v5 }
  0x1b   : > { %676 = vmatmul.mubr.msk.f32.vlgmr.msra.gmra.mrb[0].mxu0 %vm379_vm0, %v290_v12  ;;  %vm521_vm0 = vcmask 14348  }
  0x84   : > { %v281_v13 = vpop.permute.xlu1 %280 }
  0x85   : > { %v273_v14 = vpop.permute.xlu0 %272 }
  0x86   : > { %v287_v15 = vsel %vm286_vm4, %v273_v14, %v281_v13 }
  0x87   : > { %v472_v19 = vrot.slane %v287_v15, 3 }
  0x88   : > { %v283_v16 = vpop.permute.xlu1 %282 }
  0x89   : > { %v275_v17 = vpop.permute.xlu0 %274 }
  0x8a   : > { %v288_v18 = vsel %vm286_vm4, %v275_v17, %v283_v16 }
  0x8b   : > { %v473_v20 = vrot.slane %v288_v18, 3  ;;  %v678_v21 = vpack.c.bf16 %v288_v18, %v287_v15 }
  0x8d   : > { %680 = vmatprep.subr.msk.bf16.mxu1 %vm679_vm7, %v678_v21  ;;  %v474_v22 = vsel %vm465_vm3, %v472_v19, %v473_v20 }
  0x8e   : > { %683 = vmatpush3.bf16.msk.msra.mxu1 %vm679_vm7, %v678_v21  ;;  %v476_v24 = vmax.f32 %v287_v15, %v474_v22 }
  0x90   : > { %v478_v25 = vrot.slane %v476_v24, 7 }
  0x91   : > { %667 = vmatmul.mubr.msk.f32.vlgmr.msra.gmra.mrb[0].mxu1 %vm293_vm1, %v292_v23 }
  0x92   : > { %v480_v26 = vmax.f32 %v470_v11, %v478_v25 }
  0x94   : > { %v492_v35 = vsel %vm491_vm10, %v480_v26, 0.0 }
  0xee   : > { %v677_v27 = vpop.f32.mrb[0].mxu0 }
  0xef   : > { %v456_v28 = vpop.f32.mrb[1].mxu0 }
 0x164   : > { %v668_v29 = vpop.f32.mrb[0].mxu1 }
 0x165   : > { %v462_v30 = vadd.f32 %v677_v27, %v668_v29  ;;  %v370_v31 = vpop.f32.mrb[1].mxu1 }
 0x166   : > { %v457_v32 = vadd.f32 %v456_v28, %v370_v31 }
 0x167   : > { %v486_v33 = vsel %vm485_vm8, %v462_v30, 0.0 }
 0x168   : > { %487 = vadd.xlane.f32.xlu1 %v486_v33  ;;  %v482_v34 = vsel %vm481_vm9, %v457_v32, 0.0 }
 0x169   : > { %483 = vadd.xlane.f32.xlu0 %v482_v34 }
 0x16d   : > { %493 = vadd.xlane.f32.xlu0 %v492_v35 }
 0x1f5   : > { %v488_v36 = vpop.xlane.xlu1 %487 }
 0x1f6   : > { %v490_v37 = vmul.f32 0.015625, %v488_v36  ;;  %v484_v38 = vpop.xlane.xlu0 %483 }
 0x1f7   : > { %v489_v39 = vmul.f32 0.015625, %v484_v38 }
 0x1f8   : > { %499 = vst.msk [vmem:[%s826_s13 + $0x8] sm:$0x1f] %vm498_vm11, %v490_v37  ;;  %v503_v40 = vsub.f32 %v462_v30, %v490_v37 }
 0x1f9   : > { %497 = vst.msk [vmem:[%s826_s13] sm:$0xff] %vm496_vm12, %v489_v39  ;;  %v502_v41 = vsub.f32 %v457_v32, %v489_v39 }
 0x1fa   : > { %v494_v42 = vpop.xlane.xlu0 %493  ;;  %v505_v43 = vmul.f32 %v503_v40, %v503_v40 }
 0x1fb   : > { %v495_v44 = vmul.f32 0.015625, %v494_v42  ;;  %v504_v45 = vmul.f32 %v502_v41, %v502_v41 }
 0x1fc   : > { %v509_v46 = vsel %vm485_vm8, %v505_v43, 0.0 }
 0x1fd   : > { %501 = vst.msk [vmem:[%s826_s13 + $0x9] sm:$0x70] %vm500_vm13, %v495_v44  ;;  %v516_v47 = vsub.f32 %v480_v26, %v495_v44  ;;  %510 = vadd.xlane.f32.xlu1 %v509_v46  ;;  %v506_v48 = vsel %vm481_vm9, %v504_v45, 0.0 }
 0x1fe   : > { %507 = vadd.xlane.f32.xlu0 %v506_v48 }
 0x1ff   : > { %v517_v49 = vmul.f32 %v516_v47, %v516_v47 }
 0x201   : > { %v518_v50 = vsel %vm491_vm10, %v517_v49, 0.0 }
 0x202   : > { %519 = vadd.xlane.f32.xlu0 %v518_v50 }
 0x28a   : > { %v511_v51 = vpop.xlane.xlu1 %510 }
 0x28b   : > { %515 = vst.msk [vmem:[%s826_s13 + $0x8] sm:$0x1f] %vm514_vm14, %v511_v51  ;;  %v508_v52 = vpop.xlane.xlu0 %507 }
 0x28c   : > { %513 = vst.msk [vmem:[%s826_s13] sm:$0xff] %vm512_vm15, %v508_v52 }
 0x28f   : > { %v520_v53 = vpop.xlane.xlu0 %519 }
 0x290   : > { %522 = vst.msk [vmem:[%s826_s13 + $0x9] sm:$0x70] %vm521_vm0, %v520_v53 }
 0x291 PF: > { %s14_s17 = sadd.s32 1, %s740_s17   ;;  %s851_s15 = smov %s736_s16 }
 0x292   : > { %p11_p5 = scmp.ge.s32.totalorder %s14_s17, 4   ;;  %s852_s16 = smov %s854_s18 }
 0x294   :  { %13 = sbr.rel (!%p11_p5) target bundleno = 2 (0x2), region = 69 }

</bundles_post_ra>
